<compile_context>
chip_gen: v6e
topology: v6e:2x2x1
jax: 0.10.0
libtpu: 0.0.40
codegen_flags: <defaults>
</compile_context>

<pallas_src>
import jax
import jax.numpy as jnp
from jax import lax
from jax.experimental import pallas as pl
from jax.experimental.pallas import tpu as pltpu


def _bn_fold(gamma, beta, mean, var, eps=1e-5):
    s = gamma / jnp.sqrt(var + eps)
    return s, beta - mean * s


def _make_kernel(*, has_proj, Bt, L1, Cin_p, Cout_p, stride):
    s = stride
    M = Bt * L1

    def kernel(*refs):
        if has_proj:
            (xc_ref, w1_ref, w2_ref, s1_ref, b1_ref, s2_ref, b2_ref,
             a_ref, bfc_ref, ws_ref, ss_ref, bs_ref, o_ref) = refs
        else:
            (xc_ref, w1_ref, w2_ref, s1_ref, b1_ref, s2_ref, b2_ref,
             a_ref, bfc_ref, o_ref) = refs
        f32 = jnp.float32

        def tap(k):
            # conv tap k reads padded-input rows p = stride*l + k (l = 0..L1-1),
            # which live contiguously in deinterleave stream r = k % s.
            return xc_ref[:, k % s, pl.ds(k // s, L1), :]          # (Bt,L1,Cin_p)

        # ---- conv1 (k=3, stride) + BN1 + ReLU: one fused matmul, K = 3*Cin_p
        im1 = jnp.concatenate([tap(0).reshape(M, Cin_p),
                               tap(1).reshape(M, Cin_p),
                               tap(2).reshape(M, Cin_p)], axis=-1)
        h1 = jnp.dot(im1, w1_ref[...], preferred_element_type=f32)
        h1 = jnp.maximum(h1 * s1_ref[...] + b1_ref[...], 0.0)

        # ---- conv2 (k=3, stride=1, pad=1) + BN2: windows of one zero-padded
        # copy of h1 feed a single fused matmul with K = 3*Cout_p.
        h1_3d = h1.reshape(Bt, L1, Cout_p)
        zrow = jnp.zeros((Bt, 1, Cout_p), f32)
        hpad = jnp.concatenate([zrow, h1_3d, zrow], axis=1)        # (Bt,L1+2,C)
        im2 = jnp.concatenate([hpad[:, 0:L1, :].reshape(M, Cout_p),
                               hpad[:, 1:L1 + 1, :].reshape(M, Cout_p),
                               hpad[:, 2:L1 + 2, :].reshape(M, Cout_p)], axis=-1)
        h2 = jnp.dot(im2, w2_ref[...], preferred_element_type=f32)
        h2 = h2 * s2_ref[...] + b2_ref[...]
        h2_3d = h2.reshape(Bt, L1, Cout_p)

        # ---- squeeze-excite: global avg pool -> Linear -> Linear -> sigmoid
        y = jnp.mean(h2_3d, axis=1)                                # (Bt, Cout_p)
        z = jnp.dot(y, a_ref[...], preferred_element_type=f32)
        wgt = jax.nn.sigmoid(jnp.dot(z, bfc_ref[...], preferred_element_type=f32))
        out = h2_3d * wgt[:, None, :]

        # ---- shortcut: x[:, :, stride*l] == padded-x row (stride*l + 1)
        sc = xc_ref[:, 1 % s, pl.ds(1 // s, L1), :]                # (Bt,L1,Cin_p)
        if has_proj:
            sc = jnp.dot(sc.reshape(M, Cin_p), ws_ref[...],
                         preferred_element_type=f32)
            sc = (sc * ss_ref[...] + bs_ref[...]).reshape(Bt, L1, Cout_p)
        # identity case: Cin_p == Cout_p, shortcut is x itself (already padded).

        o_ref[...] = jnp.maximum(out + sc, 0.0).astype(o_ref.dtype)

    return kernel


def se_resnet_block_1d_pallas(x, params, stride, *, block_batch=None):
    """x: (B, Cin, L) float32 in PyTorch NCL layout. Returns (B, Cout, L_out)."""
    B, Cin, L = x.shape
    f32 = jnp.float32
    w1 = params["w1"]                                  # (Cout, Cin, 3)
    w2 = params["w2"]                                  # (Cout, Cout, 3)
    Cout = w1.shape[0]
    Chid = params["fc1"].shape[0]                      # Cout // 2
    s = int(stride)
    L1 = (L + 2 - 3) // s + 1
    has_proj = (s != 1) or (Cin != Cout)

    rup = lambda n, m: ((n + m - 1) // m) * m
    Cin_p, Cout_p, Ch_p = rup(Cin, 128), rup(Cout, 128), rup(Chid, 128)

    # ---- activations: channels-last, conv zero-pad, channel pad, then
    # deinterleave by stride into (B, s, Lq, Cin_p) so every in-kernel tap read
    # is a contiguous slice (input HBM bytes stay ~1x; no 3x tap stack).
    x_nlc = jnp.transpose(x, (0, 2, 1)).astype(f32)                # (B, L, Cin)
    Lp = L + 2
    Lq = -(-Lp // s)
    x_pad = jnp.pad(x_nlc, ((0, 0), (1, Lq * s - Lp + 1), (0, Cin_p - Cin)))
    xc = x_pad.reshape(B, Lq, s, Cin_p).transpose(0, 2, 1, 3)      # (B,s,Lq,Cin_p)

    # batch blocking: several batch elements per grid step (amortize per-step
    # overhead, bigger matmul M), capped so intermediates stay VMEM-friendly.
    if block_batch is None:
        Bt = max(1, min(B, 8, max(1, 2048 // max(L1, 1))))
    else:
        Bt = max(1, min(int(block_batch), B))
    B_pad = rup(B, Bt)
    if B_pad != B:
        xc = jnp.pad(xc, ((0, B_pad - B), (0, 0), (0, 0), (0, 0)))

    # ---- weights / folded BN params, zero-padded to lane-aligned shapes
    def cpadvec(v):                                    # (Cout,) -> (1, Cout_p)
        return jnp.zeros((1, Cout_p), f32).at[0, :Cout].set(v.astype(f32))

    w1_p = (jnp.zeros((3, Cin_p, Cout_p), f32)
            .at[:, :Cin, :Cout].set(jnp.transpose(w1, (2, 1, 0)).astype(f32))
            .reshape(3 * Cin_p, Cout_p))
    w2_p = (jnp.zeros((3, Cout_p, Cout_p), f32)
            .at[:, :Cout, :Cout].set(jnp.transpose(w2, (2, 1, 0)).astype(f32))
            .reshape(3 * Cout_p, Cout_p))
    s1, b1 = _bn_fold(*params["bn1"])
    s2, b2 = _bn_fold(*params["bn2"])
    a_p = jnp.zeros((Cout_p, Ch_p), f32).at[:Cout, :Chid].set(
        params["fc1"].T.astype(f32))
    bfc_p = jnp.zeros((Ch_p, Cout_p), f32).at[:Chid, :Cout].set(
        params["fc2"].T.astype(f32))

    args = [xc, w1_p, w2_p, cpadvec(s1), cpadvec(b1), cpadvec(s2), cpadvec(b2),
            a_p, bfc_p]
    in_specs = [
        pl.BlockSpec((Bt, s, Lq, Cin_p), lambda b: (b, 0, 0, 0)),   # input taps
        pl.BlockSpec((3 * Cin_p, Cout_p), lambda b: (0, 0)),        # conv1 w
        pl.BlockSpec((3 * Cout_p, Cout_p), lambda b: (0, 0)),       # conv2 w
        pl.BlockSpec((1, Cout_p), lambda b: (0, 0)),                # bn1 scale
        pl.BlockSpec((1, Cout_p), lambda b: (0, 0)),                # bn1 shift
        pl.BlockSpec((1, Cout_p), lambda b: (0, 0)),                # bn2 scale
        pl.BlockSpec((1, Cout_p), lambda b: (0, 0)),                # bn2 shift
        pl.BlockSpec((Cout_p, Ch_p), lambda b: (0, 0)),             # fc1^T
        pl.BlockSpec((Ch_p, Cout_p), lambda b: (0, 0)),             # fc2^T
    ]
    if has_proj:
        ws_p = jnp.zeros((Cin_p, Cout_p), f32).at[:Cin, :Cout].set(
            params["ws"][:, :, 0].T.astype(f32))
        ss, bs = _bn_fold(*params["bns"])
        args += [ws_p, cpadvec(ss), cpadvec(bs)]
        in_specs += [
            pl.BlockSpec((Cin_p, Cout_p), lambda b: (0, 0)),        # shortcut w
            pl.BlockSpec((1, Cout_p), lambda b: (0, 0)),            # bn_sc scale
            pl.BlockSpec((1, Cout_p), lambda b: (0, 0)),            # bn_sc shift
        ]

    out_specs = pl.BlockSpec((Bt, L1, Cout_p), lambda b: (b, 0, 0))

    # advisory cost estimate so XLA schedules surrounding transposes/pads sanely
    mm_flops = 2 * B_pad * L1 * Cout_p * (3 * Cin_p + 3 * Cout_p
                                          + (Cin_p if has_proj else 0))
    se_flops = 2 * B_pad * 2 * Cout_p * Ch_p
    bytes_accessed = 4 * (xc.size + w1_p.size + w2_p.size + a_p.size
                          + bfc_p.size + B_pad * L1 * Cout_p)
    cost = pl.CostEstimate(flops=int(mm_flops + se_flops),
                           transcendentals=int(B_pad * Cout_p),
                           bytes_accessed=int(bytes_accessed))

    kernel = _make_kernel(has_proj=has_proj, Bt=Bt, L1=L1,
                          Cin_p=Cin_p, Cout_p=Cout_p, stride=s)

    out_nlc = pl.pallas_call(
        kernel,
        out_shape=jax.ShapeDtypeStruct((B_pad, L1, Cout_p), f32),
        grid=(B_pad // Bt,),
        in_specs=in_specs,
        out_specs=out_specs,
        compiler_params=pltpu.CompilerParams(
            dimension_semantics=("parallel",),
            vmem_limit_bytes=64 * 1024 * 1024),
        cost_estimate=cost,
    )(*args)

    # strip batch / channel padding, back to PyTorch NCL layout
    return jnp.transpose(out_nlc[:B, :, :Cout], (0, 2, 1))


def ref_forward(x, p, stride):
    """Pure-JAX reference mirroring the PyTorch module (eval-mode BN)."""
    def conv1d(v, w, s, pad):
        return lax.conv_general_dilated(
            v, w, window_strides=(s,), padding=[(pad, pad)],
            dimension_numbers=("NCH", "OIH", "NCH"))

    def bn(v, stats, eps=1e-5):
        g, b, m, vr = stats
        return ((v - m[None, :, None]) / jnp.sqrt(vr[None, :, None] + eps)
                * g[None, :, None] + b[None, :, None])

    out = conv1d(x, p["w1"], stride, 1)
    out = jax.nn.relu(bn(out, p["bn1"]))
    out = conv1d(out, p["w2"], 1, 1)
    out = bn(out, p["bn2"])
    y = jnp.mean(out, axis=2)                                   # AdaptiveAvgPool1d(1)
    w = jax.nn.sigmoid((y @ p["fc1"].T) @ p["fc2"].T)
    out = out * w[:, :, None]
    sc = bn(conv1d(x, p["ws"], stride, 0), p["bns"]) if "ws" in p else x
    return jax.nn.relu(out + sc)


def init_params(key, Cin, Cout, stride):
    ks = jax.random.split(key, 8)

    def bn_params(k, C):
        k1, k2, k3, k4 = jax.random.split(k, 4)
        gamma = 0.8 + 0.4 * jax.random.uniform(k1, (C,), jnp.float32)
        beta = 0.1 * jax.random.normal(k2, (C,), jnp.float32)
        mean = 0.1 * jax.random.normal(k3, (C,), jnp.float32)
        var = 0.5 + jax.random.uniform(k4, (C,), jnp.float32)
        return gamma, beta, mean, var

    p = {
        "w1": 0.3 * jax.random.normal(ks[0], (Cout, Cin, 3), jnp.float32),
        "bn1": bn_params(ks[1], Cout),
        "w2": 0.3 * jax.random.normal(ks[2], (Cout, Cout, 3), jnp.float32),
        "bn2": bn_params(ks[3], Cout),
        "fc1": 0.3 * jax.random.normal(ks[4], (Cout // 2, Cout), jnp.float32),
        "fc2": 0.3 * jax.random.normal(ks[5], (Cout, Cout // 2), jnp.float32),
    }
    if stride != 1 or Cin != Cout:
        p["ws"] = 0.3 * jax.random.normal(ks[6], (Cout, Cin, 1), jnp.float32)
        p["bns"] = bn_params(ks[7], Cout)
    return p


if __name__ == "__main__":
    key = jax.random.PRNGKey(0)
    kx, kp, kp2 = jax.random.split(key, 3)

    # projection-shortcut variant (stride=2, Cin != Cout)
    B, Cin, Cout, L, stride = 2, 4, 8, 16, 2
    x = jax.random.normal(kx, (B, Cin, L), jnp.float32)
    params = init_params(kp, Cin, Cout, stride)
    out = jax.block_until_ready(se_resnet_block_1d_pallas(x, params, stride))
    ref = ref_forward(x, params, stride)
    assert out.shape == ref.shape, (out.shape, ref.shape)
    err = float(jnp.max(jnp.abs(out - ref)))
    assert jnp.allclose(out, ref, rtol=1e-4, atol=1e-4), err

    # identity-shortcut variant (stride=1, Cin == Cout): specialized kernel path
    x2 = jax.random.normal(kx, (B, Cout, L), jnp.float32)
    params_id = init_params(kp2, Cout, Cout, 1)
    out2 = jax.block_until_ready(se_resnet_block_1d_pallas(x2, params_id, 1))
    ref2 = ref_forward(x2, params_id, 1)
    assert out2.shape == ref2.shape, (out2.shape, ref2.shape)
    err2 = float(jnp.max(jnp.abs(out2 - ref2)))
    assert jnp.allclose(out2, ref2, rtol=1e-4, atol=1e-4), err2

    print("KERNEL_OK")
</pallas_src>

<mosaic_0001>
module attributes {stable_mosaic.version = 11 : i64} {
  func.func @kernel(%arg0: i32, %arg1: memref<2x2x9x128xf32, #tpu.memory_space<vmem>>, %arg2: memref<384x128xf32, #tpu.memory_space<vmem>>, %arg3: memref<384x128xf32, #tpu.memory_space<vmem>>, %arg4: memref<1x128xf32, #tpu.memory_space<vmem>>, %arg5: memref<1x128xf32, #tpu.memory_space<vmem>>, %arg6: memref<1x128xf32, #tpu.memory_space<vmem>>, %arg7: memref<1x128xf32, #tpu.memory_space<vmem>>, %arg8: memref<128x128xf32, #tpu.memory_space<vmem>>, %arg9: memref<128x128xf32, #tpu.memory_space<vmem>>, %arg10: memref<128x128xf32, #tpu.memory_space<vmem>>, %arg11: memref<1x128xf32, #tpu.memory_space<vmem>>, %arg12: memref<1x128xf32, #tpu.memory_space<vmem>>, %arg13: memref<2x8x128xf32, #tpu.memory_space<vmem>>) attributes {dimension_semantics = [#tpu.dimension_semantics<parallel>], iteration_bounds = array<i64: 1>, scalar_prefetch = 0 : i64, scratch_operands = 0 : i64, tpu.core_type = #tpu.core_type<tc>, window_params = [{transform_indices = @transform_0, window_bounds = array<i64: 2, 2, 9, 128>}, {pipeline_mode = #tpu.pipeline_mode<synchronous>, transform_indices = @transform_1, window_bounds = array<i64: 384, 128>}, {pipeline_mode = #tpu.pipeline_mode<synchronous>, transform_indices = @transform_2, window_bounds = array<i64: 384, 128>}, {pipeline_mode = #tpu.pipeline_mode<synchronous>, transform_indices = @transform_3, window_bounds = array<i64: 1, 128>}, {pipeline_mode = #tpu.pipeline_mode<synchronous>, transform_indices = @transform_4, window_bounds = array<i64: 1, 128>}, {pipeline_mode = #tpu.pipeline_mode<synchronous>, transform_indices = @transform_5, window_bounds = array<i64: 1, 128>}, {pipeline_mode = #tpu.pipeline_mode<synchronous>, transform_indices = @transform_6, window_bounds = array<i64: 1, 128>}, {pipeline_mode = #tpu.pipeline_mode<synchronous>, transform_indices = @transform_7, window_bounds = array<i64: 128, 128>}, {pipeline_mode = #tpu.pipeline_mode<synchronous>, transform_indices = @transform_8, window_bounds = array<i64: 128, 128>}, {pipeline_mode = #tpu.pipeline_mode<synchronous>, transform_indices = @transform_9, window_bounds = array<i64: 128, 128>}, {pipeline_mode = #tpu.pipeline_mode<synchronous>, transform_indices = @transform_10, window_bounds = array<i64: 1, 128>}, {pipeline_mode = #tpu.pipeline_mode<synchronous>, transform_indices = @transform_11, window_bounds = array<i64: 1, 128>}, {transform_indices = @transform_12, window_bounds = array<i64: 2, 8, 128>}]} {
    %c0 = arith.constant 0 : index
    %c0_0 = arith.constant 0 : index
    %c0_1 = arith.constant 0 : index
    %c0_2 = arith.constant 0 : index
    %0 = vector.load %arg1[%c0, %c0_0, %c0_1, %c0_2] : memref<2x2x9x128xf32, #tpu.memory_space<vmem>>, vector<2x1x8x128xf32>
    %1 = vector.shape_cast %0 : vector<2x1x8x128xf32> to vector<2x8x128xf32>
    %2 = vector.shape_cast %1 : vector<2x8x128xf32> to vector<16x128xf32>
    %c0_3 = arith.constant 0 : index
    %c1 = arith.constant 1 : index
    %c0_4 = arith.constant 0 : index
    %c0_5 = arith.constant 0 : index
    %3 = vector.load %arg1[%c0_3, %c1, %c0_4, %c0_5] : memref<2x2x9x128xf32, #tpu.memory_space<vmem>>, vector<2x1x8x128xf32>
    %4 = vector.shape_cast %3 : vector<2x1x8x128xf32> to vector<2x8x128xf32>
    %5 = vector.shape_cast %4 : vector<2x8x128xf32> to vector<16x128xf32>
    %c0_6 = arith.constant 0 : index
    %c0_7 = arith.constant 0 : index
    %c1_8 = arith.constant 1 : index
    %c0_9 = arith.constant 0 : index
    %6 = vector.load %arg1[%c0_6, %c0_7, %c1_8, %c0_9] : memref<2x2x9x128xf32, #tpu.memory_space<vmem>>, vector<2x1x8x128xf32>
    %7 = vector.shape_cast %6 : vector<2x1x8x128xf32> to vector<2x8x128xf32>
    %8 = vector.shape_cast %7 : vector<2x8x128xf32> to vector<16x128xf32>
    %9 = tpu.concatenate %2, %5, %8 in 1 : vector<16x128xf32>, vector<16x128xf32>, vector<16x128xf32> -> vector<16x384xf32>
    %c0_10 = arith.constant 0 : index
    %c0_11 = arith.constant 0 : index
    %10 = vector.load %arg2[%c0_10, %c0_11] : memref<384x128xf32, #tpu.memory_space<vmem>>, vector<384x128xf32>
    %cst = arith.constant dense<0.000000e+00> : vector<16x128xf32>
    %11 = tpu.matmul %9, %10, %cst {dimension_numbers = #tpu.dot_dimension_numbers<[1], [0], [0], [1], [0, 0, 1, 1], [], []>} : vector<16x384xf32>, vector<384x128xf32>, vector<16x128xf32> -> vector<16x128xf32>
    %c0_12 = arith.constant 0 : index
    %c0_13 = arith.constant 0 : index
    %12 = vector.load %arg4[%c0_12, %c0_13] : memref<1x128xf32, #tpu.memory_space<vmem>>, vector<1x128xf32>
    %13 = vector.broadcast %12 : vector<1x128xf32> to vector<16x128xf32>
    %14 = arith.mulf %11, %13 : vector<16x128xf32>
    %c0_14 = arith.constant 0 : index
    %c0_15 = arith.constant 0 : index
    %15 = vector.load %arg5[%c0_14, %c0_15] : memref<1x128xf32, #tpu.memory_space<vmem>>, vector<1x128xf32>
    %16 = vector.broadcast %15 : vector<1x128xf32> to vector<16x128xf32>
    %17 = arith.addf %14, %16 : vector<16x128xf32>
    %cst_16 = arith.constant 0.000000e+00 : f32
    %18 = vector.broadcast %cst_16 : f32 to vector<16x128xf32>
    %19 = arith.maximumf %17, %18 : vector<16x128xf32>
    %20 = vector.shape_cast %19 : vector<16x128xf32> to vector<2x8x128xf32>
    %cst_17 = arith.constant 0.000000e+00 : f32
    %21 = vector.broadcast %cst_17 : f32 to vector<2x1x128xf32>
    %22 = tpu.concatenate %21, %20, %21 in 1 : vector<2x1x128xf32>, vector<2x8x128xf32>, vector<2x1x128xf32> -> vector<2x10x128xf32>
    %23 = vector.extract_strided_slice %22 {offsets = [0, 0, 0], sizes = [2, 8, 128], strides = [1, 1, 1]} : vector<2x10x128xf32> to vector<2x8x128xf32>
    %24 = vector.shape_cast %23 : vector<2x8x128xf32> to vector<16x128xf32>
    %25 = vector.extract_strided_slice %22 {offsets = [0, 1, 0], sizes = [2, 8, 128], strides = [1, 1, 1]} : vector<2x10x128xf32> to vector<2x8x128xf32>
    %26 = vector.shape_cast %25 : vector<2x8x128xf32> to vector<16x128xf32>
    %27 = vector.extract_strided_slice %22 {offsets = [0, 2, 0], sizes = [2, 8, 128], strides = [1, 1, 1]} : vector<2x10x128xf32> to vector<2x8x128xf32>
    %28 = vector.shape_cast %27 : vector<2x8x128xf32> to vector<16x128xf32>
    %29 = tpu.concatenate %24, %26, %28 in 1 : vector<16x128xf32>, vector<16x128xf32>, vector<16x128xf32> -> vector<16x384xf32>
    %c0_18 = arith.constant 0 : index
    %c0_19 = arith.constant 0 : index
    %30 = vector.load %arg3[%c0_18, %c0_19] : memref<384x128xf32, #tpu.memory_space<vmem>>, vector<384x128xf32>
    %cst_20 = arith.constant dense<0.000000e+00> : vector<16x128xf32>
    %31 = tpu.matmul %29, %30, %cst_20 {dimension_numbers = #tpu.dot_dimension_numbers<[1], [0], [0], [1], [0, 0, 1, 1], [], []>} : vector<16x384xf32>, vector<384x128xf32>, vector<16x128xf32> -> vector<16x128xf32>
    %c0_21 = arith.constant 0 : index
    %c0_22 = arith.constant 0 : index
    %32 = vector.load %arg6[%c0_21, %c0_22] : memref<1x128xf32, #tpu.memory_space<vmem>>, vector<1x128xf32>
    %33 = vector.broadcast %32 : vector<1x128xf32> to vector<16x128xf32>
    %34 = arith.mulf %31, %33 : vector<16x128xf32>
    %c0_23 = arith.constant 0 : index
    %c0_24 = arith.constant 0 : index
    %35 = vector.load %arg7[%c0_23, %c0_24] : memref<1x128xf32, #tpu.memory_space<vmem>>, vector<1x128xf32>
    %36 = vector.broadcast %35 : vector<1x128xf32> to vector<16x128xf32>
    %37 = arith.addf %34, %36 : vector<16x128xf32>
    %38 = vector.shape_cast %37 : vector<16x128xf32> to vector<2x8x128xf32>
    %cst_25 = arith.constant dense<0.000000e+00> : vector<2x128xf32>
    %39 = vector.multi_reduction <add>, %38, %cst_25 [1] : vector<2x8x128xf32> to vector<2x128xf32>
    %cst_26 = arith.constant 8.000000e+00 : f32
    %40 = vector.broadcast %cst_26 : f32 to vector<2x128xf32>
    %41 = arith.divf %39, %40 : vector<2x128xf32>
    %c0_27 = arith.constant 0 : index
    %c0_28 = arith.constant 0 : index
    %42 = vector.load %arg8[%c0_27, %c0_28] : memref<128x128xf32, #tpu.memory_space<vmem>>, vector<128x128xf32>
    %cst_29 = arith.constant dense<0.000000e+00> : vector<2x128xf32>
    %43 = tpu.matmul %41, %42, %cst_29 {dimension_numbers = #tpu.dot_dimension_numbers<[1], [0], [0], [1], [0, 0, 1, 1], [], []>} : vector<2x128xf32>, vector<128x128xf32>, vector<2x128xf32> -> vector<2x128xf32>
    %c0_30 = arith.constant 0 : index
    %c0_31 = arith.constant 0 : index
    %44 = vector.load %arg9[%c0_30, %c0_31] : memref<128x128xf32, #tpu.memory_space<vmem>>, vector<128x128xf32>
    %cst_32 = arith.constant dense<0.000000e+00> : vector<2x128xf32>
    %45 = tpu.matmul %43, %44, %cst_32 {dimension_numbers = #tpu.dot_dimension_numbers<[1], [0], [0], [1], [0, 0, 1, 1], [], []>} : vector<2x128xf32>, vector<128x128xf32>, vector<2x128xf32> -> vector<2x128xf32>
    %46 = arith.negf %45 : vector<2x128xf32>
    %47 = math.exp %46 : vector<2x128xf32>
    %cst_33 = arith.constant 1.000000e+00 : f32
    %48 = vector.broadcast %cst_33 : f32 to vector<2x128xf32>
    %49 = arith.addf %48, %47 : vector<2x128xf32>
    %50 = arith.divf %48, %49 : vector<2x128xf32>
    %51 = vector.shape_cast %50 : vector<2x128xf32> to vector<2x1x128xf32>
    %52 = vector.broadcast %51 : vector<2x1x128xf32> to vector<2x8x128xf32>
    %53 = arith.mulf %38, %52 : vector<2x8x128xf32>
    %c0_34 = arith.constant 0 : index
    %c1_35 = arith.constant 1 : index
    %c0_36 = arith.constant 0 : index
    %c0_37 = arith.constant 0 : index
    %54 = vector.load %arg1[%c0_34, %c1_35, %c0_36, %c0_37] : memref<2x2x9x128xf32, #tpu.memory_space<vmem>>, vector<2x1x8x128xf32>
    %55 = vector.shape_cast %54 : vector<2x1x8x128xf32> to vector<2x8x128xf32>
    %56 = vector.shape_cast %55 : vector<2x8x128xf32> to vector<16x128xf32>
    %c0_38 = arith.constant 0 : index
    %c0_39 = arith.constant 0 : index
    %57 = vector.load %arg10[%c0_38, %c0_39] : memref<128x128xf32, #tpu.memory_space<vmem>>, vector<128x128xf32>
    %cst_40 = arith.constant dense<0.000000e+00> : vector<16x128xf32>
    %58 = tpu.matmul %56, %57, %cst_40 {dimension_numbers = #tpu.dot_dimension_numbers<[1], [0], [0], [1], [0, 0, 1, 1], [], []>} : vector<16x128xf32>, vector<128x128xf32>, vector<16x128xf32> -> vector<16x128xf32>
    %c0_41 = arith.constant 0 : index
    %c0_42 = arith.constant 0 : index
    %59 = vector.load %arg11[%c0_41, %c0_42] : memref<1x128xf32, #tpu.memory_space<vmem>>, vector<1x128xf32>
    %60 = vector.broadcast %59 : vector<1x128xf32> to vector<16x128xf32>
    %61 = arith.mulf %58, %60 : vector<16x128xf32>
    %c0_43 = arith.constant 0 : index
    %c0_44 = arith.constant 0 : index
    %62 = vector.load %arg12[%c0_43, %c0_44] : memref<1x128xf32, #tpu.memory_space<vmem>>, vector<1x128xf32>
    %63 = vector.broadcast %62 : vector<1x128xf32> to vector<16x128xf32>
    %64 = arith.addf %61, %63 : vector<16x128xf32>
    %65 = vector.shape_cast %64 : vector<16x128xf32> to vector<2x8x128xf32>
    %66 = arith.addf %53, %65 : vector<2x8x128xf32>
    %cst_45 = arith.constant 0.000000e+00 : f32
    %67 = vector.broadcast %cst_45 : f32 to vector<2x8x128xf32>
    %68 = arith.maximumf %66, %67 : vector<2x8x128xf32>
    %c0_46 = arith.constant 0 : index
    %c0_47 = arith.constant 0 : index
    %c0_48 = arith.constant 0 : index
    %69 = vector.load %arg13[%c0_46, %c0_47, %c0_48] : memref<2x8x128xf32, #tpu.memory_space<vmem>>, vector<2x8x128xf32>
    tpu.vector_store %arg13[%c0_46, %c0_47, %c0_48], %68 {strides = array<i32>} : memref<2x8x128xf32, #tpu.memory_space<vmem>>, vector<2x8x128xf32>,
    return
  }
  func.func @transform_0(%arg0: i32) -> (i32, i32, i32, i32) {
    %c0_i32 = arith.constant 0 : i32
    %c0_i32_0 = arith.constant 0 : i32
    %c0_i32_1 = arith.constant 0 : i32
    %c0_i32_2 = arith.constant 0 : i32
    return %arg0, %c0_i32, %c0_i32_0, %c0_i32_1 : i32, i32, i32, i32
  }
  func.func @transform_1(%arg0: i32) -> (i32, i32) {
    %c0_i32 = arith.constant 0 : i32
    %c0_i32_0 = arith.constant 0 : i32
    %c0_i32_1 = arith.constant 0 : i32
    return %c0_i32, %c0_i32_0 : i32, i32
  }
  func.func @transform_2(%arg0: i32) -> (i32, i32) {
    %c0_i32 = arith.constant 0 : i32
    %c0_i32_0 = arith.constant 0 : i32
    %c0_i32_1 = arith.constant 0 : i32
    return %c0_i32, %c0_i32_0 : i32, i32
  }
  func.func @transform_3(%arg0: i32) -> (i32, i32) {
    %c0_i32 = arith.constant 0 : i32
    %c0_i32_0 = arith.constant 0 : i32
    %c0_i32_1 = arith.constant 0 : i32
    return %c0_i32, %c0_i32_0 : i32, i32
  }
  func.func @transform_4(%arg0: i32) -> (i32, i32) {
    %c0_i32 = arith.constant 0 : i32
    %c0_i32_0 = arith.constant 0 : i32
    %c0_i32_1 = arith.constant 0 : i32
    return %c0_i32, %c0_i32_0 : i32, i32
  }
  func.func @transform_5(%arg0: i32) -> (i32, i32) {
    %c0_i32 = arith.constant 0 : i32
    %c0_i32_0 = arith.constant 0 : i32
    %c0_i32_1 = arith.constant 0 : i32
    return %c0_i32, %c0_i32_0 : i32, i32
  }
  func.func @transform_6(%arg0: i32) -> (i32, i32) {
    %c0_i32 = arith.constant 0 : i32
    %c0_i32_0 = arith.constant 0 : i32
    %c0_i32_1 = arith.constant 0 : i32
    return %c0_i32, %c0_i32_0 : i32, i32
  }
  func.func @transform_7(%arg0: i32) -> (i32, i32) {
    %c0_i32 = arith.constant 0 : i32
    %c0_i32_0 = arith.constant 0 : i32
    %c0_i32_1 = arith.constant 0 : i32
    return %c0_i32, %c0_i32_0 : i32, i32
  }
  func.func @transform_8(%arg0: i32) -> (i32, i32) {
    %c0_i32 = arith.constant 0 : i32
    %c0_i32_0 = arith.constant 0 : i32
    %c0_i32_1 = arith.constant 0 : i32
    return %c0_i32, %c0_i32_0 : i32, i32
  }
  func.func @transform_9(%arg0: i32) -> (i32, i32) {
    %c0_i32 = arith.constant 0 : i32
    %c0_i32_0 = arith.constant 0 : i32
    %c0_i32_1 = arith.constant 0 : i32
    return %c0_i32, %c0_i32_0 : i32, i32
  }
  func.func @transform_10(%arg0: i32) -> (i32, i32) {
    %c0_i32 = arith.constant 0 : i32
    %c0_i32_0 = arith.constant 0 : i32
    %c0_i32_1 = arith.constant 0 : i32
    return %c0_i32, %c0_i32_0 : i32, i32
  }
  func.func @transform_11(%arg0: i32) -> (i32, i32) {
    %c0_i32 = arith.constant 0 : i32
    %c0_i32_0 = arith.constant 0 : i32
    %c0_i32_1 = arith.constant 0 : i32
    return %c0_i32, %c0_i32_0 : i32, i32
  }
  func.func @transform_12(%arg0: i32) -> (i32, i32, i32) {
    %c0_i32 = arith.constant 0 : i32
    %c0_i32_0 = arith.constant 0 : i32
    %c0_i32_1 = arith.constant 0 : i32
    return %arg0, %c0_i32, %c0_i32_0 : i32, i32, i32
  }
}

</mosaic_0001>

<bundles_post_ra>
// kernel: tpu_custom_call.1
= control target key start
LH: loop header
LB: loop body
LE: loop exit
PB: predicated region body
PF: predicated region fallthrough
CT: control target
= control target key end

     0   :  { %17 = vsyncpa [#allocation3], 0  ;;  %s1663_s0 = inlined_call_operand.vmem [shape: f32[2,2,9,128], index: 0, kind: input, shape index: {}]   ;;  %s1664_s1 = inlined_call_operand.hbm [shape: f32[384,128], index: 1, kind: input, shape index: {}]   ;;  %s1665_s2 = inlined_call_operand.hbm [shape: f32[384,128], index: 2, kind: input, shape index: {}]   ;;  %s1666_s3 = inlined_call_operand.vmem [shape: f32[1,128], index: 3, kind: input, shape index: {}]   ;;  %s1667_s4 = inlined_call_operand.vmem [shape: f32[1,128], index: 4, kind: input, shape index: {}]   ;;  %s1668_s5 = inlined_call_operand.vmem [shape: f32[1,128], index: 5, kind: input, shape index: {}]   ;;  %s1669_s6 = inlined_call_operand.vmem [shape: f32[1,128], index: 6, kind: input, shape index: {}]   ;;  %s1670_s7 = inlined_call_operand.hbm [shape: f32[128,128], index: 7, kind: input, shape index: {}]   ;;  %s1671_s8 = inlined_call_operand.hbm [shape: f32[128,128], index: 8, kind: input, shape index: {}]   ;;  %s1672_s9 = inlined_call_operand.hbm [shape: f32[128,128], index: 9, kind: input, shape index: {}]   ;;  %s1673_s10 = inlined_call_operand.vmem [shape: f32[1,128], index: 10, kind: input, shape index: {}]   ;;  %s1674_s11 = inlined_call_operand.vmem [shape: f32[1,128], index: 11, kind: input, shape index: {}]   ;;  %s1675_s12 = inlined_call_operand.hbm [shape: f32[2,8,128], index: 12, kind: output, shape index: {}]  }
   0x1   :  { %18 = vsyncpa [#allocation6], 0 }
   0x2   :  { %19 = vsyncpa [#allocation9], 0 }
   0x3   :  { %20 = vsyncpa [#allocation4], 0  ;;  %s1446_s21 = smov [#allocation5]   ;;  %s1447_s23 = smov [#allocation8]  }
   0x4   :  { %s40_s22 = sshll.u32 %s1446_s21, 4  ;;  %s72_s24 = sshll.u32 %s1447_s23, 4  ;;  %s41_s22 = int_to_ptr.vmem [resolvable:$true] %s40_s22  ;;  %s73_s24 = int_to_ptr.vmem [resolvable:$true] %s72_s24 }
   0x5   :  { %s1326_s25 = scalar_lea.vmem %s41_s22, 6144  ;;  %p1331_p1 = scmp.lt.s32.totalorder %s41_s22, %s41_s22 }
   0x6   :  { %p1327_p0 = scmp.ne.s32.totalorder %s41_s22, %s1326_s25  ;;  %p1332_p2 = scmp.lt.s32.totalorder %s1326_s25, %s1326_s25 }
   0x8   :  { %p1333_p3 = por %p1332_p2, %p1331_p1 }
   0xa   :  { %p1334_p4 = pnand %p1333_p3, %p1327_p0 }
   0xc   :  { %1337 = shalt.err (!%p1334_p4)
}
   0xd   :  { %s1448_s26 = smov 128   ;;  %s1449_s27 = smov 8  }
   0xe   :  { %46 = dma.hbm_to_vmem [thread:$0]  %s1665_s2, 6144, %s41_s22, [#allocation6], %s1448_s26, %s1448_s26, %s1449_s27  }
   0xf   :  { %s1346_s30 = scalar_lea.vmem %s73_s24, 2048  ;;  %p1351_p6 = scmp.lt.s32.totalorder %s73_s24, %s73_s24 }
  0x10   :  { %p1347_p5 = scmp.ne.s32.totalorder %s73_s24, %s1346_s30  ;;  %p1352_p7 = scmp.lt.s32.totalorder %s1346_s30, %s1346_s30 }
  0x12   :  { %p1353_p8 = por %p1352_p7, %p1351_p6 }
  0x14   :  { %p1354_p9 = pnand %p1353_p8, %p1347_p5 }
  0x16   :  { %1357 = shalt.err (!%p1354_p9)
}
  0x17   :  { %78 = dma.hbm_to_vmem [thread:$0]  %s1671_s8, 2048, %s73_s24, [#allocation9], %s1448_s26, %s1448_s26, %s1449_s27  }
  0x18   :  { %s1450_s15 = smov [#allocation2]   ;;  %s1451_s17 = smov [#allocation7]  }
  0x19   :  { %s28_s16 = sshll.u32 %s1450_s15, 4  ;;  %s60_s18 = sshll.u32 %s1451_s17, 4  ;;  %s29_s16 = int_to_ptr.vmem [resolvable:$true] %s28_s16  ;;  %s61_s18 = int_to_ptr.vmem [resolvable:$true] %s60_s18 }
  0x1a   :  { %s1366_s2 = scalar_lea.vmem %s29_s16, 6144  ;;  %p1371_p11 = scmp.lt.s32.totalorder %s29_s16, %s29_s16 }
  0x1b   :  { %p1367_p10 = scmp.ne.s32.totalorder %s29_s16, %s1366_s2  ;;  %p1372_p12 = scmp.lt.s32.totalorder %s1366_s2, %s1366_s2 }
  0x1d   :  { %p1373_p13 = por %p1372_p12, %p1371_p11 }
  0x1f   :  { %p1374_p0 = pnand %p1373_p13, %p1367_p10 }
  0x21   :  { %1377 = shalt.err (!%p1374_p0)
}
  0x22   :  { %34 = dma.hbm_to_vmem [thread:$0]  %s1664_s1, 6144, %s29_s16, [#allocation3], %s1448_s26, %s1448_s26, %s1449_s27  }
  0x23   :  { %s1386_s8 = scalar_lea.vmem %s61_s18, 2048  ;;  %p1391_p2 = scmp.lt.s32.totalorder %s61_s18, %s61_s18 }
  0x24   :  { %p1387_p1 = scmp.ne.s32.totalorder %s61_s18, %s1386_s8  ;;  %p1392_p3 = scmp.lt.s32.totalorder %s1386_s8, %s1386_s8 }
  0x26   :  { %p1393_p4 = por %p1392_p3, %p1391_p2 }
  0x28   :  { %p1394_p5 = pnand %p1393_p4, %p1387_p1 }
  0x2a   :  { %1397 = shalt.err (!%p1394_p5)
}
  0x2b   :  { %66 = dma.hbm_to_vmem [thread:$0]  %s1670_s7, 2048, %s61_s18, [#allocation6], %s1448_s26, %s1448_s26, %s1449_s27  }
  0x2c   :  { %s1452_s23 = smov [#allocation10]  }
  0x2d   :  { %s84_s24 = sshll.u32 %s1452_s23, 4  ;;  %s85_s24 = int_to_ptr.vmem [resolvable:$true] %s84_s24 }
  0x2e   :  { %s1406_s25 = scalar_lea.vmem %s85_s24, 2048  ;;  %p1411_p7 = scmp.lt.s32.totalorder %s85_s24, %s85_s24 }
  0x2f   :  { %p1407_p6 = scmp.ne.s32.totalorder %s85_s24, %s1406_s25  ;;  %p1412_p8 = scmp.lt.s32.totalorder %s1406_s25, %s1406_s25 }
  0x31   :  { %p1413_p9 = por %p1412_p8, %p1411_p7 }
  0x33   :  { %p1414_p10 = pnand %p1413_p9, %p1407_p6 }
  0x35   :  { %1417 = shalt.err (!%p1414_p10)
}
  0x36   :  { %90 = dma.hbm_to_vmem [thread:$0]  %s1672_s9, 2048, %s85_s24, [#allocation9], %s1448_s26, %s1448_s26, %s1449_s27  }
  0x37   :  { %1438 = dma.done.wait [#allocation3], 6144  }
  0x38   :  { %1439 = vsyncadd [#allocation3], 4294961152 }
  0x39   :  { %1440 = dma.done.wait [#allocation6], 8192  }
  0x3a   :  { %1441 = vsyncadd [#allocation6], 4294959104 }
  0x3b   :  { %1442 = dma.done.wait [#allocation9], 4096  }
  0x3c   :  { %1443 = vsyncadd [#allocation9], 4294963200  ;;  %v148_v0 = vld [vmem:[#allocation2 + $0xf8] sm:$0xff]  ;;  %v147_v3 = vld [vmem:[#allocation2 + $0xf0] sm:$0xff]  ;;  %vm341_vm0 = vcmask 1040384   ;;  %vm350_vm1 = vcmask 1046528  }
  0x3d   :  { %v164_v1 = vld [vmem:[#allocation2 + $0x178] sm:$0xff]  ;;  %964 = vmatprep.subr.mxu0 %v148_v0  ;;  %v163_v4 = vld [vmem:[#allocation2 + $0x170] sm:$0xff]  ;;  %v146_v6 = vld [vmem:[#allocation2 + $0xe8] sm:$0xff]  ;;  %vm359_vm2 = vcmask 1045504   ;;  %vm1454_vm4 = vmmov 0   ;;  %vm617_vm5 = vcmask 1041409  }
  0x3e   :  { %v132_v2 = vld [vmem:[#allocation2 + $0x78] sm:$0xff]  ;;  %1128 = vmatprep.subr.mxu1 %v164_v1  ;;  %v131_v5 = vld [vmem:[#allocation2 + $0x70] sm:$0xff]  ;;  %v162_v7 = vld [vmem:[#allocation2 + $0x168] sm:$0xff] }
  0x3f   :  { %965 = vmatpush3.msra.mxu0 %v132_v2  ;;  %1129 = vmatpush3.msra.mxu1 %v164_v1  ;;  %v130_v8 = vld [vmem:[#allocation2 + $0x68] sm:$0xff]  ;;  %v145_v9 = vld [vmem:[#allocation2 + $0xe0] sm:$0xff]  ;;  %v144_v12 = vld [vmem:[#allocation2 + $0xd8] sm:$0xff] }
  0x40   :  { %966 = vmatprep.subr.mxu0 %v147_v3  ;;  %1130 = vmatprep.subr.mxu1 %v163_v4  ;;  %v161_v10 = vld [vmem:[#allocation2 + $0x160] sm:$0xff]  ;;  %v160_v13 = vld [vmem:[#allocation2 + $0x158] sm:$0xff]  ;;  %v143_v15 = vld [vmem:[#allocation2 + $0xd0] sm:$0xff] }
  0x41   :  { %967 = vmatpush3.msra.mxu0 %v131_v5  ;;  %1131 = vmatpush3.msra.mxu1 %v163_v4  ;;  %v129_v11 = vld [vmem:[#allocation2 + $0x60] sm:$0xff]  ;;  %v128_v14 = vld [vmem:[#allocation2 + $0x58] sm:$0xff]  ;;  %v159_v16 = vld [vmem:[#allocation2 + $0x150] sm:$0xff] }
  0x42   :  { %968 = vmatprep.subr.mxu0 %v146_v6  ;;  %1132 = vmatprep.subr.mxu1 %v162_v7  ;;  %v127_v17 = vld [vmem:[#allocation2 + $0x50] sm:$0xff]  ;;  %v142_v18 = vld [vmem:[#allocation2 + $0xc8] sm:$0xff]  ;;  %v141_v21 = vld [vmem:[#allocation2 + $0xc0] sm:$0xff] }
  0x43   :  { %969 = vmatpush3.msra.mxu0 %v130_v8  ;;  %1133 = vmatpush3.msra.mxu1 %v162_v7  ;;  %v158_v19 = vld [vmem:[#allocation2 + $0x148] sm:$0xff]  ;;  %v157_v22 = vld [vmem:[#allocation2 + $0x140] sm:$0xff]  ;;  %v140_v24 = vld [vmem:[#allocation2 + $0xb8] sm:$0xff] }
  0x44   :  { %970 = vmatprep.subr.mxu0 %v145_v9  ;;  %1134 = vmatprep.subr.mxu1 %v161_v10  ;;  %v126_v20 = vld [vmem:[#allocation2 + $0x48] sm:$0xff]  ;;  %v125_v23 = vld [vmem:[#allocation2 + $0x40] sm:$0xff]  ;;  %v156_v25 = vld [vmem:[#allocation2 + $0x138] sm:$0xff] }
  0x45   :  { %971 = vmatpush3.msra.mxu0 %v129_v11  ;;  %1135 = vmatpush3.msra.mxu1 %v161_v10  ;;  %v124_v26 = vld [vmem:[#allocation2 + $0x38] sm:$0xff]  ;;  %v139_v27 = vld [vmem:[#allocation2 + $0xb0] sm:$0xff]  ;;  %v138_v30 = vld [vmem:[#allocation2 + $0xa8] sm:$0xff] }
  0x46   :  { %972 = vmatprep.subr.mxu0 %v144_v12  ;;  %1136 = vmatprep.subr.mxu1 %v160_v13  ;;  %v155_v28 = vld [vmem:[#allocation2 + $0x130] sm:$0xff]  ;;  %v154_v31 = vld [vmem:[#allocation2 + $0x128] sm:$0xff]  ;;  %v137_v33 = vld [vmem:[#allocation2 + $0xa0] sm:$0xff] }
  0x47   :  { %973 = vmatpush3.msra.mxu0 %v128_v14  ;;  %1137 = vmatpush3.msra.mxu1 %v160_v13  ;;  %v123_v29 = vld [vmem:[#allocation2 + $0x30] sm:$0xff]  ;;  %v122_v32 = vld [vmem:[#allocation2 + $0x28] sm:$0xff]  ;;  %v153_v34 = vld [vmem:[#allocation2 + $0x120] sm:$0xff] }
  0x48   :  { %974 = vmatprep.subr.mxu0 %v143_v15  ;;  %1138 = vmatprep.subr.mxu1 %v159_v16  ;;  %v121_v35 = vld [vmem:[#allocation2 + $0x20] sm:$0xff]  ;;  %v136_v36 = vld [vmem:[#allocation2 + $0x98] sm:$0xff]  ;;  %v135_v39 = vld [vmem:[#allocation2 + $0x90] sm:$0xff] }
  0x49   :  { %975 = vmatpush3.msra.mxu0 %v127_v17  ;;  %1139 = vmatpush3.msra.mxu1 %v159_v16  ;;  %v152_v37 = vld [vmem:[#allocation2 + $0x118] sm:$0xff]  ;;  %v151_v40 = vld [vmem:[#allocation2 + $0x110] sm:$0xff]  ;;  %v134_v42 = vld [vmem:[#allocation2 + $0x88] sm:$0xff] }
  0x4a   :  { %976 = vmatprep.subr.mxu0 %v142_v18  ;;  %1140 = vmatprep.subr.mxu1 %v158_v19  ;;  %v120_v38 = vld [vmem:[#allocation2 + $0x18] sm:$0xff]  ;;  %v119_v41 = vld [vmem:[#allocation2 + $0x10] sm:$0xff]  ;;  %v150_v43 = vld [vmem:[#allocation2 + $0x108] sm:$0xff] }
  0x4b   :  { %977 = vmatpush3.msra.mxu0 %v126_v20  ;;  %1141 = vmatpush3.msra.mxu1 %v158_v19  ;;  %v118_v44 = vld [vmem:[#allocation2 + $0x8] sm:$0xff]  ;;  %v133_v45 = vld [vmem:[#allocation2 + $0x80] sm:$0xff]  ;;  %v1555_v48 = vld [vmem:[%s1663_s0 + $0x10] sm:$0xff] }
  0x4c   :  { %978 = vmatprep.subr.mxu0 %v141_v21  ;;  %1142 = vmatprep.subr.mxu1 %v157_v22  ;;  %v149_v46 = vld [vmem:[#allocation2 + $0x100] sm:$0xff]  ;;  %v1570_v52 = vld [vmem:[%s1663_s0 + $0x30] sm:$0xff]  ;;  %v399_v53 = vld [vmem:[#allocation5 + $0xf8] sm:$0xff] }
  0x4d   :  { %979 = vmatpush3.msra.mxu0 %v125_v23  ;;  %1143 = vmatpush3.msra.mxu1 %v157_v22  ;;  %v117_v47 = vld [vmem:[#allocation2] sm:$0xff]  ;;  %v383_v54 = vld [vmem:[#allocation5 + $0x78] sm:$0xff]  ;;  %v398_v56 = vld [vmem:[#allocation5 + $0xf0] sm:$0xff] }
  0x4e   :  { %980 = vmatprep.subr.mxu0 %v140_v24  ;;  %1144 = vmatprep.subr.mxu1 %v156_v25  ;;  %v115_v49 = vld [vmem:[%s1663_s0 + $0x1] sm:$0xff]  ;;  %v415_v55 = vld [vmem:[#allocation5 + $0x178] sm:$0xff]  ;;  %v414_v58 = vld [vmem:[#allocation5 + $0x170] sm:$0xff] }
  0x4f   :  { %981 = vmatpush3.msra.mxu0 %v124_v26  ;;  %1145 = vmatpush3.msra.mxu1 %v156_v25  ;;  %v110_v50 = vld [vmem:[%s1663_s0] sm:$0xff]  ;;  %v382_v59 = vld [vmem:[#allocation5 + $0x70] sm:$0xff]  ;;  %v397_v60 = vld [vmem:[#allocation5 + $0xe8] sm:$0xff] }
  0x50   :  { %982 = vmatprep.subr.mxu0 %v139_v27  ;;  %1146 = vmatprep.subr.mxu1 %v155_v28  ;;  %v116_v51 = vld [vmem:[%s1663_s0 + $0x21] sm:$0xff]  ;;  %v395_v2 = vld [vmem:[#allocation5 + $0xd8] sm:$0xff]  ;;  %v394_v5 = vld [vmem:[#allocation5 + $0xd0] sm:$0xff] }
  0x51   :  { %983 = vmatpush3.msra.mxu0 %v123_v29  ;;  %1147 = vmatpush3.msra.mxu1 %v155_v28  ;;  %v111_v57 = vld [vmem:[%s1663_s0 + $0x20] sm:$0xff]  ;;  %v413_v61 = vld [vmem:[#allocation5 + $0x168] sm:$0xff]  ;;  %v411_v3 = vld [vmem:[#allocation5 + $0x158] sm:$0xff] }
  0x52   :  { %984 = vmatprep.subr.mxu0 %v138_v30  ;;  %1148 = vmatprep.subr.mxu1 %v154_v31  ;;  %v381_v62 = vld [vmem:[#allocation5 + $0x68] sm:$0xff]  ;;  %v396_v63 = vld [vmem:[#allocation5 + $0xe0] sm:$0xff]  ;;  %v379_v4 = vld [vmem:[#allocation5 + $0x58] sm:$0xff] }
  0x53   :  { %985 = vmatpush3.msra.mxu0 %v122_v32  ;;  %1149 = vmatpush3.msra.mxu1 %v154_v31  ;;  %v412_v0 = vld [vmem:[#allocation5 + $0x160] sm:$0xff]  ;;  %v378_v6 = vld [vmem:[#allocation5 + $0x50] sm:$0xff]  ;;  %v393_v7 = vld [vmem:[#allocation5 + $0xc8] sm:$0xff] }
  0x54   :  { %986 = vmatprep.subr.mxu0 %v137_v33  ;;  %1150 = vmatprep.subr.mxu1 %v153_v34  ;;  %v380_v1 = vld [vmem:[#allocation5 + $0x60] sm:$0xff]  ;;  %v377_v8 = vld [vmem:[#allocation5 + $0x48] sm:$0xff]  ;;  %v410_v9 = vld [vmem:[#allocation5 + $0x150] sm:$0xff] }
  0x55   :  { %987 = vmatpush3.msra.mxu0 %v121_v35  ;;  %1151 = vmatpush3.msra.mxu1 %v153_v34  ;;  %v392_v10 = vld [vmem:[#allocation5 + $0xc0] sm:$0xff]  ;;  %v409_v12 = vld [vmem:[#allocation5 + $0x148] sm:$0xff]  ;;  %v391_v13 = vld [vmem:[#allocation5 + $0xb8] sm:$0xff] }
  0x56   :  { %988 = vmatprep.subr.mxu0 %v136_v36  ;;  %1152 = vmatprep.subr.mxu1 %v152_v37  ;;  %v376_v11 = vld [vmem:[#allocation5 + $0x40] sm:$0xff]  ;;  %v375_v14 = vld [vmem:[#allocation5 + $0x38] sm:$0xff]  ;;  %v390_v16 = vld [vmem:[#allocation5 + $0xb0] sm:$0xff] }
  0x57   :  { %989 = vmatpush3.msra.mxu0 %v120_v38  ;;  %1153 = vmatpush3.msra.mxu1 %v152_v37  ;;  %v408_v15 = vld [vmem:[#allocation5 + $0x140] sm:$0xff]  ;;  %v374_v17 = vld [vmem:[#allocation5 + $0x30] sm:$0xff]  ;;  %v407_v18 = vld [vmem:[#allocation5 + $0x138] sm:$0xff]  ;;  %v1453_v38 = vmov 0.0  }
  0x58   :  { %990 = vmatprep.subr.mxu0 %v135_v39  ;;  %1154 = vmatprep.subr.mxu1 %v151_v40  ;;  %v389_v19 = vld [vmem:[#allocation5 + $0xa8] sm:$0xff]  ;;  %v406_v21 = vld [vmem:[#allocation5 + $0x130] sm:$0xff]  ;;  %v388_v22 = vld [vmem:[#allocation5 + $0xa0] sm:$0xff] }
  0x59   :  { %991 = vmatpush3.msra.mxu0 %v119_v41  ;;  %1155 = vmatpush3.msra.mxu1 %v151_v40  ;;  %v373_v20 = vld [vmem:[#allocation5 + $0x28] sm:$0xff]  ;;  %v372_v23 = vld [vmem:[#allocation5 + $0x20] sm:$0xff]  ;;  %v387_v25 = vld [vmem:[#allocation5 + $0x98] sm:$0xff] }
  0x5a   :  { %992 = vmatprep.subr.mxu0 %v134_v42  ;;  %1156 = vmatprep.subr.mxu1 %v150_v43  ;;  %v405_v24 = vld [vmem:[#allocation5 + $0x128] sm:$0xff]  ;;  %v371_v26 = vld [vmem:[#allocation5 + $0x18] sm:$0xff]  ;;  %v404_v27 = vld [vmem:[#allocation5 + $0x120] sm:$0xff] }
  0x5b   :  { %993 = vmatpush3.msra.mxu0 %v118_v44  ;;  %1157 = vmatpush3.msra.mxu1 %v150_v43  ;;  %v386_v28 = vld [vmem:[#allocation5 + $0x90] sm:$0xff]  ;;  %v403_v30 = vld [vmem:[#allocation5 + $0x118] sm:$0xff]  ;;  %v385_v31 = vld [vmem:[#allocation5 + $0x88] sm:$0xff] }
  0x5c   :  { %994 = vmatprep.subr.mxu0 %v133_v45  ;;  %1158 = vmatprep.subr.mxu1 %v149_v46  ;;  %v370_v29 = vld [vmem:[#allocation5 + $0x10] sm:$0xff]  ;;  %v369_v32 = vld [vmem:[#allocation5 + $0x8] sm:$0xff]  ;;  %v384_v34 = vld [vmem:[#allocation5 + $0x80] sm:$0xff] }
  0x5d   :  { %995 = vmatpush3.msra.mxu0 %v117_v47  ;;  %229 = vmatprep.mubr.f32.mxu0 %v1555_v48  ;;  %v402_v33 = vld [vmem:[#allocation5 + $0x110] sm:$0xff]  ;;  %v368_v35 = vld [vmem:[#allocation5] sm:$0xff]  ;;  %v401_v36 = vld [vmem:[#allocation5 + $0x108] sm:$0xff] }
  0x5e   :  { %1159 = vmatpush3.msra.mxu1 %v149_v46  ;;  %1160 = vmatprep.mubr.f32.mxu1 %v115_v49  ;;  %v400_v37 = vld [vmem:[#allocation5 + $0x100] sm:$0xff]  ;;  %vm1587_vm3 = vmneg %vm341_vm0 }
  0x5f   :  { %230 = vmatmul.mubr.f32.vlgmr.msra.gmra.mxu0 %v110_v50  ;;  %1161 = vmatmul.mubr.f32.vlgmr.msra.gmra.mxu1 %v116_v51  ;;  %v953_v44 = vld [vmem:[%s1666_s3] ss:$0 sm:$0xff] }
  0x60   :  { %234 = vmatprep.mubr.f32.mxu0 %v1570_v52  ;;  %1020 = vmatprep.subr.mxu0 %v399_v53  ;;  %v954_v47 = vld [vmem:[%s1667_s4] ss:$0 sm:$0xff] }
  0x61   :  { %1021 = vmatpush3.msra.mxu0 %v383_v54  ;;  %1163 = vmatprep.subr.mxu1 %v415_v55 }
  0x62   :  { %1022 = vmatprep.subr.mxu0 %v398_v56  ;;  %1164 = vmatpush3.msra.mxu1 %v415_v55 }
  0x63   :  { %235 = vmatmul.mubr.f32.gmra.mxu0 %v111_v57  ;;  %1165 = vmatprep.subr.mxu1 %v414_v58 }
  0x64   :  { %1023 = vmatpush3.msra.mxu0 %v382_v59  ;;  %1166 = vmatpush3.msra.mxu1 %v414_v58 }
  0x65   :  { %1024 = vmatprep.subr.mxu0 %v397_v60  ;;  %1167 = vmatprep.subr.mxu1 %v413_v61 }
  0x66   :  { %1025 = vmatpush3.msra.mxu0 %v381_v62  ;;  %1168 = vmatpush3.msra.mxu1 %v413_v61 }
  0x67   :  { %1026 = vmatprep.subr.mxu0 %v396_v63  ;;  %1169 = vmatprep.subr.mxu1 %v412_v0 }
  0x68   :  { %1027 = vmatpush3.msra.mxu0 %v380_v1  ;;  %1170 = vmatpush3.msra.mxu1 %v412_v0 }
  0x69   :  { %1028 = vmatprep.subr.mxu0 %v395_v2  ;;  %1171 = vmatprep.subr.mxu1 %v411_v3 }
  0x6a   :  { %1029 = vmatpush3.msra.mxu0 %v379_v4  ;;  %1172 = vmatpush3.msra.mxu1 %v411_v3 }
  0x6b   :  { %1030 = vmatprep.subr.mxu0 %v394_v5  ;;  %1173 = vmatprep.subr.mxu1 %v410_v9 }
  0x6c   :  { %1031 = vmatpush3.msra.mxu0 %v378_v6  ;;  %1174 = vmatpush3.msra.mxu1 %v410_v9  ;;  %v614_v6 = vld [vmem:[#allocation7 + $0x78] sm:$0xff] }
  0x6d   :  { %1032 = vmatprep.subr.mxu0 %v393_v7  ;;  %1175 = vmatprep.subr.mxu1 %v409_v12 }
  0x6e   :  { %1033 = vmatpush3.msra.mxu0 %v377_v8  ;;  %1176 = vmatpush3.msra.mxu1 %v409_v12 }
  0x6f   :  { %1034 = vmatprep.subr.mxu0 %v392_v10  ;;  %1177 = vmatprep.subr.mxu1 %v408_v15 }
  0x70   :  { %1035 = vmatpush3.msra.mxu0 %v376_v11  ;;  %1178 = vmatpush3.msra.mxu1 %v408_v15  ;;  %v613_v15 = vld [vmem:[#allocation7 + $0x70] sm:$0xff] }
  0x71   :  { %1036 = vmatprep.subr.mxu0 %v391_v13  ;;  %1179 = vmatprep.subr.mxu1 %v407_v18 }
  0x72   :  { %1037 = vmatpush3.msra.mxu0 %v375_v14  ;;  %1180 = vmatpush3.msra.mxu1 %v407_v18  ;;  %v610_v18 = vld [vmem:[#allocation7 + $0x58] sm:$0xff] }
  0x73   :  { %1038 = vmatprep.subr.mxu0 %v390_v16  ;;  %1181 = vmatprep.subr.mxu1 %v406_v21  ;;  %v612_v16 = vld [vmem:[#allocation7 + $0x68] sm:$0xff] }
  0x74   :  { %1039 = vmatpush3.msra.mxu0 %v374_v17  ;;  %1182 = vmatpush3.msra.mxu1 %v406_v21  ;;  %v611_v17 = vld [vmem:[#allocation7 + $0x60] sm:$0xff] }
  0x75   :  { %1040 = vmatprep.subr.mxu0 %v389_v19  ;;  %1183 = vmatprep.subr.mxu1 %v405_v24  ;;  %v609_v19 = vld [vmem:[#allocation7 + $0x50] sm:$0xff]  ;;  %v607_v21 = vld [vmem:[#allocation7 + $0x40] sm:$0xff] }
  0x76   :  { %1041 = vmatpush3.msra.mxu0 %v373_v20  ;;  %1184 = vmatpush3.msra.mxu1 %v405_v24  ;;  %v608_v20 = vld [vmem:[#allocation7 + $0x48] sm:$0xff] }
  0x77   :  { %1042 = vmatprep.subr.mxu0 %v388_v22  ;;  %1185 = vmatprep.subr.mxu1 %v404_v27  ;;  %v606_v22 = vld [vmem:[#allocation7 + $0x38] sm:$0xff]  ;;  %v604_v24 = vld [vmem:[#allocation7 + $0x28] sm:$0xff] }
  0x78   :  { %1043 = vmatpush3.msra.mxu0 %v372_v23  ;;  %1186 = vmatpush3.msra.mxu1 %v404_v27  ;;  %v605_v23 = vld [vmem:[#allocation7 + $0x30] sm:$0xff] }
  0x79   :  { %1044 = vmatprep.subr.mxu0 %v387_v25  ;;  %1187 = vmatprep.subr.mxu1 %v403_v30  ;;  %v603_v25 = vld [vmem:[#allocation7 + $0x20] sm:$0xff]  ;;  %v601_v27 = vld [vmem:[#allocation7 + $0x10] sm:$0xff] }
  0x7a   :  { %1045 = vmatpush3.msra.mxu0 %v371_v26  ;;  %1188 = vmatpush3.msra.mxu1 %v403_v30  ;;  %v602_v26 = vld [vmem:[#allocation7 + $0x18] sm:$0xff] }
  0x7b   :  { %1046 = vmatprep.subr.mxu0 %v386_v28  ;;  %1189 = vmatprep.subr.mxu1 %v402_v33  ;;  %v600_v28 = vld [vmem:[#allocation7 + $0x8] sm:$0xff]  ;;  %v705_v30 = vld [vmem:[#allocation8 + $0x78] sm:$0xff] }
  0x7c   :  { %1047 = vmatpush3.msra.mxu0 %v370_v29  ;;  %1190 = vmatpush3.msra.mxu1 %v402_v33  ;;  %v599_v29 = vld [vmem:[#allocation7] sm:$0xff] }
  0x7d   :  { %1048 = vmatprep.subr.mxu0 %v385_v31  ;;  %1191 = vmatprep.subr.mxu1 %v401_v36  ;;  %v704_v31 = vld [vmem:[#allocation8 + $0x70] sm:$0xff]  ;;  %v702_v33 = vld [vmem:[#allocation8 + $0x60] sm:$0xff] }
  0x7e   :  { %1049 = vmatpush3.msra.mxu0 %v369_v32  ;;  %1192 = vmatpush3.msra.mxu1 %v401_v36  ;;  %v703_v32 = vld [vmem:[#allocation8 + $0x68] sm:$0xff] }
  0x7f   :  { %1050 = vmatprep.subr.mxu0 %v384_v34  ;;  %1193 = vmatprep.subr.mxu1 %v400_v37  ;;  %v701_v34 = vld [vmem:[#allocation8 + $0x58] sm:$0xff]  ;;  %v699_v36 = vld [vmem:[#allocation8 + $0x48] sm:$0xff] }
  0x80   :  { %1051 = vmatpush3.msra.mxu0 %v368_v35  ;;  %1194 = vmatpush3.msra.mxu1 %v400_v37  ;;  %v700_v35 = vld [vmem:[#allocation8 + $0x50] sm:$0xff]  ;;  %v698_v37 = vld [vmem:[#allocation8 + $0x40] sm:$0xff] }
  0x81   :  { %1198 = vmatprep.subr.mxu0 %v1453_v38  ;;  %1233 = vmatprep.subr.mxu1 %v1453_v38 }
 0x11f   :  { %v996_v39 = vpop.f32.mrf.mxu0  ;;  %v1162_v40 = vpop.f32.mrf.mxu1 }
 0x121   :  { %v997_v41 = vpop.f32.mrf.mxu0  ;;  %v306_v43 = vpop.f32.mrf.mxu1 }
 0x122   :  { %v998_v42 = vadd.f32 %v997_v41, %v996_v39  ;;  %v697_v39 = vld [vmem:[#allocation8 + $0x38] sm:$0xff]  ;;  %v695_v41 = vld [vmem:[#allocation8 + $0x28] sm:$0xff] }
 0x123   :  { %v999_v45 = vpop.f32.mrf.mxu0 }
 0x124   :  { %v307_v46 = vadd.f32 %v998_v42, %v306_v43  ;;  %v694_v42 = vld [vmem:[#allocation8 + $0x20] sm:$0xff]  ;;  %v693_v43 = vld [vmem:[#allocation8 + $0x18] sm:$0xff] }
 0x125   :  { %v1000_v49 = vpop.f32.mrf.mxu0 }
 0x126   :  { %v322_v50 = vmul.f32 %v953_v44, %v307_v46  ;;  %v1001_v51 = vadd.f32 %v1000_v49, %v999_v45  ;;  %v691_v45 = vld [vmem:[#allocation8 + $0x8] sm:$0xff] }
 0x128   :  { %v331_v53 = vadd.f32 %v954_v47, %v322_v50  ;;  %v312_v54 = vadd.f32 %v1162_v40, %v1001_v51  ;;  %v696_v40 = vld [vmem:[#allocation8 + $0x30] sm:$0xff] }
 0x12a   :  { %v333_v55 = vmax.f32 %v331_v53, 0.0  ;;  %v323_v56 = vmul.f32 %v953_v44, %v312_v54  ;;  %v692_v44 = vld [vmem:[#allocation8 + $0x10] sm:$0xff]  ;;  %v959_v54 = vld [vmem:[%s1668_s5] ss:$0 sm:$0xff] }
 0x12c   :  { %v337_v57 = vrot.slane %v333_v55, 7  ;;  %v332_v58 = vadd.f32 %v954_v47, %v323_v56 }
 0x12e   :  { %v334_v59 = vmax.f32 %v332_v58, 0.0  ;;  %v342_v60 = vsel %vm341_vm0, 0.0, %v337_v57  ;;  %v344_v61 = vsel %vm341_vm0, %v337_v57, 0.0 }
 0x12f   :  { %v351_v62 = vrot.slane %v342_v60, 1  ;;  %v352_v63 = vrot.slane %v344_v61, 1  ;;  %v360_v0 = vrot.slane %v342_v60, 2  ;;  %v361_v1 = vrot.slane %v344_v61, 2 }
 0x130   :  { %v338_v2 = vrot.slane %v334_v59, 7 }
 0x131   :  { %v353_v4 = vsel %vm350_vm1, %v351_v62, %v352_v63  ;;  %v362_v5 = vsel %vm359_vm2, %v360_v0, %v361_v1 }
 0x132   :  { %480 = vmatprep.mubr.f32.mxu0 %v353_v4  ;;  %1195 = vmatprep.mubr.f32.mxu1 %v362_v5  ;;  %v343_v7 = vsel %vm341_vm0, 0.0, %v338_v2  ;;  %v345_v8 = vsel %vm341_vm0, %v338_v2, 0.0 }
 0x133   :  { %956 = vmatmul.mubr.msk.f32.vlgmr.msra.gmra.mxu0 %vm1587_vm3, %v337_v57  ;;  %v354_v9 = vrot.slane %v343_v7, 1  ;;  %v355_v10 = vrot.slane %v345_v8, 1  ;;  %v363_v11 = vrot.slane %v343_v7, 2  ;;  %v364_v12 = vrot.slane %v345_v8, 2  ;;  %v960_v57 = vld [vmem:[%s1669_s6] ss:$0 sm:$0xff] }
 0x134   :  { %1199 = vmatpush3.msra.mxu0 %v614_v6 }
 0x135   :  { %v356_v13 = vsel %vm350_vm1, %v354_v9, %v355_v10  ;;  %v365_v14 = vsel %vm359_vm2, %v363_v11, %v364_v12  ;;  %1200 = vmatprep.subr.mxu0 %v1453_v38 }
 0x136   :  { %485 = vmatprep.mubr.f32.mxu0 %v356_v13  ;;  %1196 = vmatmul.mubr.f32.vlgmr.msra.gmra.mxu1 %v365_v14  ;;  %v690_v14 = vld [vmem:[#allocation8] sm:$0xff] }
 0x137   :  { %958 = vmatmul.mubr.msk.f32.gmra.mxu0 %vm1587_vm3, %v338_v2  ;;  %1265 = vmatprep.mubr.msk.f32.mxu1 %vm1454_vm4, %v1453_v38 }
 0x138   :  { %1201 = vmatpush3.msra.mxu0 %v613_v15  ;;  %1230 = vmatprep.mubr.msk.f32.mxu0 %vm1454_vm4, %v1453_v38  ;;  %v832_v15 = vld [vmem:[#allocation10 + $0x78] sm:$0xff] }
 0x139   :  { %1202 = vmatprep.subr.mxu0 %v1453_v38  ;;  %1234 = vmatpush3.msra.mxu1 %v705_v30 }
 0x13a   :  { %1203 = vmatpush3.msra.mxu0 %v612_v16  ;;  %1235 = vmatprep.subr.mxu1 %v1453_v38  ;;  %v831_v16 = vld [vmem:[#allocation10 + $0x70] sm:$0xff] }
 0x13b   :  { %1204 = vmatprep.subr.mxu0 %v1453_v38  ;;  %1236 = vmatpush3.msra.mxu1 %v704_v31 }
 0x13c   :  { %1205 = vmatpush3.msra.mxu0 %v611_v17  ;;  %1237 = vmatprep.subr.mxu1 %v1453_v38  ;;  %v830_v17 = vld [vmem:[#allocation10 + $0x68] sm:$0xff] }
 0x13d   :  { %1206 = vmatprep.subr.mxu0 %v1453_v38  ;;  %1238 = vmatpush3.msra.mxu1 %v703_v32 }
 0x13e   :  { %1207 = vmatpush3.msra.mxu0 %v610_v18  ;;  %1239 = vmatprep.subr.mxu1 %v1453_v38  ;;  %v829_v18 = vld [vmem:[#allocation10 + $0x60] sm:$0xff] }
 0x13f   :  { %1208 = vmatprep.subr.mxu0 %v1453_v38  ;;  %1240 = vmatpush3.msra.mxu1 %v702_v33 }
 0x140   :  { %1209 = vmatpush3.msra.mxu0 %v609_v19  ;;  %1241 = vmatprep.subr.mxu1 %v1453_v38  ;;  %v828_v19 = vld [vmem:[#allocation10 + $0x58] sm:$0xff] }
 0x141   :  { %1210 = vmatprep.subr.mxu0 %v1453_v38  ;;  %1242 = vmatpush3.msra.mxu1 %v701_v34 }
 0x142   :  { %1211 = vmatpush3.msra.mxu0 %v608_v20  ;;  %1243 = vmatprep.subr.mxu1 %v1453_v38  ;;  %v827_v20 = vld [vmem:[#allocation10 + $0x50] sm:$0xff] }
 0x143   :  { %1212 = vmatprep.subr.mxu0 %v1453_v38  ;;  %1244 = vmatpush3.msra.mxu1 %v700_v35 }
 0x144   :  { %1213 = vmatpush3.msra.mxu0 %v607_v21  ;;  %1245 = vmatprep.subr.mxu1 %v1453_v38  ;;  %v826_v21 = vld [vmem:[#allocation10 + $0x48] sm:$0xff] }
 0x145   :  { %1214 = vmatprep.subr.mxu0 %v1453_v38  ;;  %1246 = vmatpush3.msra.mxu1 %v699_v36 }
 0x146   :  { %1215 = vmatpush3.msra.mxu0 %v606_v22  ;;  %1247 = vmatprep.subr.mxu1 %v1453_v38  ;;  %v824_v22 = vld [vmem:[#allocation10 + $0x38] sm:$0xff] }
 0x147   :  { %1216 = vmatprep.subr.mxu0 %v1453_v38  ;;  %1248 = vmatpush3.msra.mxu1 %v698_v37  ;;  %v1455_v37 = vmov 1966171168  }
 0x148   :  { %1217 = vmatpush3.msra.mxu0 %v605_v23  ;;  %1249 = vmatprep.subr.mxu1 %v1453_v38  ;;  %v823_v23 = vld [vmem:[#allocation10 + $0x30] sm:$0xff] }
 0x149   :  { %1218 = vmatprep.subr.mxu0 %v1453_v38  ;;  %1250 = vmatpush3.msra.mxu1 %v697_v39  ;;  %v784_v39 = vunpack.c.l.s4 %v1455_v37 }
 0x14a   :  { %1219 = vmatpush3.msra.mxu0 %v604_v24  ;;  %1251 = vmatprep.subr.mxu1 %v1453_v38  ;;  %v822_v24 = vld [vmem:[#allocation10 + $0x28] sm:$0xff] }
 0x14b   :  { %1220 = vmatprep.subr.mxu0 %v1453_v38  ;;  %1252 = vmatpush3.msra.mxu1 %v696_v40  ;;  %v786_v40 = vlaneseq }
 0x14c   :  { %1221 = vmatpush3.msra.mxu0 %v603_v25  ;;  %1253 = vmatprep.subr.mxu1 %v1453_v38  ;;  %v821_v25 = vld [vmem:[#allocation10 + $0x20] sm:$0xff] }
 0x14d   :  { %1222 = vmatprep.subr.mxu0 %v1453_v38  ;;  %1254 = vmatpush3.msra.mxu1 %v695_v41  ;;  %v785_v41 = vunpack.c.0.s8 %v784_v39 }
 0x14e   :  { %1223 = vmatpush3.msra.mxu0 %v602_v26  ;;  %1255 = vmatprep.subr.mxu1 %v1453_v38  ;;  %v820_v26 = vld [vmem:[#allocation10 + $0x18] sm:$0xff] }
 0x14f   :  { %1224 = vmatprep.subr.mxu0 %v1453_v38  ;;  %1256 = vmatpush3.msra.mxu1 %v694_v42  ;;  %v787_v42 = vshrl.u32 %v786_v40, 7 }
 0x150   :  { %1225 = vmatpush3.msra.mxu0 %v601_v27  ;;  %1257 = vmatprep.subr.mxu1 %v1453_v38  ;;  %v819_v27 = vld [vmem:[#allocation10 + $0x10] sm:$0xff] }
 0x151   :  { %1226 = vmatprep.subr.mxu0 %v1453_v38  ;;  %1258 = vmatpush3.msra.mxu1 %v693_v43 }
 0x152   :  { %1227 = vmatpush3.msra.mxu0 %v600_v28  ;;  %1259 = vmatprep.subr.mxu1 %v1453_v38  ;;  %v818_v28 = vld [vmem:[#allocation10 + $0x8] sm:$0xff] }
 0x153   :  { %1228 = vmatprep.subr.mxu0 %v1453_v38  ;;  %1260 = vmatpush3.msra.mxu1 %v692_v44  ;;  %v788_v44 = vsub.s32 %v785_v41, %v787_v42 }
 0x154   :  { %1229 = vmatpush3.msra.mxu0 %v599_v29  ;;  %1261 = vmatprep.subr.mxu1 %v1453_v38  ;;  %v817_v29 = vld [vmem:[#allocation10] sm:$0xff] }
 0x155   :  { %1262 = vmatpush3.msra.mxu1 %v691_v45  ;;  %1268 = vmatprep.subr.mxu0 %v832_v15 }
 0x156   :  { %1263 = vmatprep.subr.mxu1 %v1453_v38 }
 0x157   :  { %1264 = vmatpush3.msra.mxu1 %v690_v14 }
 0x1f3   :  { %v1052_v46 = vpop.f32.mrf.mxu0 }
 0x1f5   :  { %v1053_v47 = vpop.f32.mrf.mxu0 }
 0x1f6   :  { %v1054_v49 = vadd.f32 %v1053_v47, %v1052_v46  ;;  %v1197_v50 = vpop.f32.mrf.mxu1 }
 0x1f7   :  { %v1055_v51 = vpop.f32.mrf.mxu0 }
 0x1f8   :  { %v557_v53 = vpop.f32.mrf.mxu1 }
 0x1f9   :  { %v558_v55 = vadd.f32 %v1054_v49, %v557_v53  ;;  %v1056_v56 = vpop.f32.mrf.mxu0  ;;  %v807_v49 = vsub.s32 0, %v787_v42 }
 0x1fa   :  { %v1057_v58 = vadd.f32 %v1056_v56, %v1055_v51  ;;  %v963_v51 = vld [vmem:[%s1674_s11] ss:$0 sm:$0xff] }
 0x1fb   :  { %v573_v59 = vmul.f32 %v959_v54, %v558_v55 }
 0x1fc   :  { %v563_v60 = vadd.f32 %v1197_v50, %v1057_v58 }
 0x1fd   :  { %v1639_v38 = vadd.f32 %v960_v57, %v573_v59 }
 0x1fe   :  { %v574_v61 = vmul.f32 %v959_v54, %v563_v60 }
 0x1ff   :  { %v584_v62 = vrot.slane %v1639_v38, 4 }
 0x200   :  { %v1642_v63 = vadd.f32 %v960_v57, %v574_v61 }
 0x201   :  { %v585_v0 = vadd.f32 %v584_v62, %v1639_v38 }
 0x202   :  { %v590_v1 = vrot.slane %v1642_v63, 4 }
 0x203   :  { %v586_v2 = vrot.slane %v585_v0, 2 }
 0x204   :  { %v591_v3 = vadd.f32 %v590_v1, %v1642_v63 }
 0x205   :  { %v587_v4 = vadd.f32 %v586_v2, %v585_v0 }
 0x206   :  { %v592_v5 = vrot.slane %v591_v3, 2 }
 0x207   :  { %v588_v6 = vrot.slane %v587_v4, 1 }
 0x208   :  { %v593_v7 = vadd.f32 %v592_v5, %v591_v3 }
 0x209   :  { %v589_v8 = vadd.f32 %v588_v6, %v587_v4 }
 0x20a   :  { %v594_v9 = vrot.slane %v593_v7, 1 }
 0x20b   :  { %v597_v11 = vmul.f32 0.125, %v589_v8 }
 0x20c   :  { %v595_v10 = vadd.f32 %v594_v9, %v593_v7 }
 0x20e   :  { %v598_v12 = vmul.f32 0.125, %v595_v10 }
 0x210   :  { %v618_v13 = vsel %vm617_vm5, %v598_v12, %v597_v11 }
 0x211   :  { %1231 = vmatmul.mubr.f32.vlgmr.msra.gmra.mxu0 %v618_v13 }
 0x212   :  { %1300 = vmatprep.mubr.f32.mxu0 %v1555_v48  ;;  %1269 = vmatpush3.msra.mxu0 %v832_v15  ;;  %v825_v48 = vld [vmem:[#allocation10 + $0x40] sm:$0xff] }
 0x213   :  { %1270 = vmatprep.subr.mxu0 %v831_v16 }
 0x214   :  { %1271 = vmatpush3.msra.mxu0 %v831_v16 }
 0x215   :  { %1272 = vmatprep.subr.mxu0 %v830_v17 }
 0x216   :  { %1273 = vmatpush3.msra.mxu0 %v830_v17 }
 0x217   :  { %1274 = vmatprep.subr.mxu0 %v829_v18 }
 0x218   :  { %1275 = vmatpush3.msra.mxu0 %v829_v18 }
 0x219   :  { %1276 = vmatprep.subr.mxu0 %v828_v19 }
 0x21a   :  { %1277 = vmatpush3.msra.mxu0 %v828_v19 }
 0x21b   :  { %1278 = vmatprep.subr.mxu0 %v827_v20 }
 0x21c   :  { %1279 = vmatpush3.msra.mxu0 %v827_v20 }
 0x21d   :  { %1280 = vmatprep.subr.mxu0 %v826_v21 }
 0x21e   :  { %1281 = vmatpush3.msra.mxu0 %v826_v21 }
 0x21f   :  { %1282 = vmatprep.subr.mxu0 %v825_v48 }
 0x220   :  { %1283 = vmatpush3.msra.mxu0 %v825_v48 }
 0x221   :  { %1284 = vmatprep.subr.mxu0 %v824_v22 }
 0x222   :  { %1285 = vmatpush3.msra.mxu0 %v824_v22 }
 0x223   :  { %1286 = vmatprep.subr.mxu0 %v823_v23 }
 0x224   :  { %1287 = vmatpush3.msra.mxu0 %v823_v23 }
 0x225   :  { %1288 = vmatprep.subr.mxu0 %v822_v24 }
 0x226   :  { %1289 = vmatpush3.msra.mxu0 %v822_v24 }
 0x227   :  { %1290 = vmatprep.subr.mxu0 %v821_v25 }
 0x228   :  { %1291 = vmatpush3.msra.mxu0 %v821_v25 }
 0x229   :  { %1292 = vmatprep.subr.mxu0 %v820_v26 }
 0x22a   :  { %1293 = vmatpush3.msra.mxu0 %v820_v26 }
 0x22b   :  { %1294 = vmatprep.subr.mxu0 %v819_v27 }
 0x22c   :  { %1295 = vmatpush3.msra.mxu0 %v819_v27 }
 0x22d   :  { %1296 = vmatprep.subr.mxu0 %v818_v28 }
 0x22e   :  { %1297 = vmatpush3.msra.mxu0 %v818_v28 }
 0x22f   :  { %1298 = vmatprep.subr.mxu0 %v817_v29 }
 0x230   :  { %1299 = vmatpush3.msra.mxu0 %v817_v29 }
 0x231   :  { %1301 = vmatmul.mubr.f32.vlgmr.msra.gmra.mxu0 %v1570_v52  ;;  %v962_v52 = vld [vmem:[%s1673_s10] ss:$0 sm:$0xff]  ;;  %s1456_s10 = smov [#allocation11]  }
 0x232   :  { %s937_s1 = sshll.u32 %s1456_s10, 4  ;;  %s938_s1 = int_to_ptr.vmem [resolvable:$true] %s937_s1 }
 0x233   :  { %s1418_s11 = scalar_lea.vmem %s938_s1, 256  ;;  %p1423_p12 = scmp.lt.s32.totalorder %s938_s1, %s938_s1 }
 0x234   :  { %p1419_p11 = scmp.ne.s32.totalorder %s938_s1, %s1418_s11  ;;  %p1424_p13 = scmp.lt.s32.totalorder %s1418_s11, %s1418_s11 }
 0x236   :  { %p1425_p0 = por %p1424_p13, %p1423_p12 }
 0x238   :  { %p1426_p1 = pnand %p1425_p0, %p1419_p11 }
 0x2d1   :  { %v686_v30 = vpop.f32.mrf.mxu0 }
 0x2d2   :  { %1266 = vmatmul.mubr.f32.vlgmr.msra.gmra.mxu1 %v686_v30 }
 0x2d3   :  { %v1232_v31 = vpop.f32.mrf.mxu0 }
 0x2f1   :  { %v1302_v43 = vpop.f32.mrf.mxu0 }
 0x2f2   :  { %v916_v56 = vmul.f32 %v1302_v43, %v962_v52 }
 0x2f3   :  { %v899_v45 = vpop.f32.mrf.mxu0 }
 0x2f4   :  { %v915_v50 = vmul.f32 %v962_v52, %v899_v45  ;;  %v925_v62 = vadd.f32 %v963_v51, %v916_v56 }
 0x2f6   :  { %v924_v58 = vadd.f32 %v963_v51, %v915_v50 }
 0x392   :  { %v772_v32 = vpop.f32.mrf.mxu1 }
 0x393   :  { %v961_v33 = vmul.f32 -1.442695, %v772_v32 }
 0x394   :  { %v1267_v34 = vpop.f32.mrf.mxu1 }
 0x395   :  { %1314 = vpow2.f32 %v961_v33 }
 0x3a2   :  { %v1315_v35 = vpop.eup %1314 }
 0x3a3   :  { %v779_v36 = vadd.f32 1.0, %v1315_v35 }
 0x3a5   :  { %1316 = vrcp.f32 %v779_v36 }
 0x3b2   :  { %v1317_v46 = vpop.eup %1316 }
 0x3b3   :  { %v789_v47 = vrot.slane %v1317_v46, %v788_v44 }
 0x3b5   :  { %v790_v53 = vcombine.high %v789_v47, %v789_v47  ;;  %v797_v54 = vrot.slane %v789_v47, %v788_v44 }
 0x3b7   :  { %v804_v55 = vrot.slane %v790_v53, %v788_v44  ;;  %v808_v57 = vrot.slane %v797_v54, %v807_v49 }
 0x3b9   :  { %v812_v59 = vrot.slane %v804_v55, %v807_v49  ;;  %v815_v60 = vmul.f32 %v808_v57, %v1639_v38 }
 0x3bb   :  { %v816_v61 = vmul.f32 %v812_v59, %v1642_v63  ;;  %v926_v0 = vadd.f32 %v924_v58, %v815_v60 }
 0x3bd   :  { %v927_v1 = vadd.f32 %v925_v62, %v816_v61  ;;  %v928_v2 = vmax.f32 %v926_v0, 0.0 }
 0x3bf   :  { %v929_v3 = vmax.f32 %v927_v1, 0.0  ;;  %930 = vst [vmem:[#allocation11] sm:$0xff] %v928_v2 }
 0x3c1   :  { %931 = vst [vmem:[#allocation11 + $0x8] sm:$0xff] %v929_v3 }
 0x3c2   :  { %1429 = shalt.err (!%p1426_p1)
}
 0x3c3   :  { %943 = dma.vmem_to_hbm [thread:$0]  %s938_s1, 256, %s1675_s12, [#allocation4], %s1448_s26, %s1448_s26, %s1449_s27  }
 0x3c4   :  { %1444 = dma.done.wait [#allocation4], 256  }
 0x3c5   :  { %1445 = vsyncadd [#allocation4], 4294967040 }
 0x3c6   :  { %947 = vsyncpa [#allocation3], 1 }
 0x3c7   :  { %948 = vsyncpa [#allocation6], 1 }
 0x3c8   :  { %949 = vsyncpa [#allocation9], 1 }
 0x3c9   :  { %950 = vsyncpa [#allocation4], 1 }

</bundles_post_ra>
